<compile_context>
chip_gen: v5e
topology: v5e:2x2
jax: 0.10.0
libtpu: 0.0.40
codegen_flags: <defaults>
</compile_context>

<pallas_src>
from functools import partial

import jax
import jax.numpy as jnp
from jax.experimental import pallas as pl
from jax.experimental.pallas import tpu as pltpu


def valuenet_kernel(xT_ref, w1_ref, b1_ref, w2_ref, b2_ref, w3_ref, b3_ref, o_ref):
    # xT_ref: (D, TB)  bf16   x transposed: batch on the 128-lane axis
    # w1_ref: (H, D)   bf16   PyTorch layout (out, in)
    # b1_ref: (H, 1)   f32
    # w2_ref: (H, H)   bf16   PyTorch layout (out, in)
    # b2_ref: (H, 1)   f32
    # w3_ref: (1, H)   bf16   PyTorch layout (out, in)
    # b3_ref: (1,)     f32    SMEM scalar
    # o_ref:  (1, TB)  f32    lane-dense output row

    # Layer 1: h1^T = W1 @ x^T -> (H, TB). bf16 MXU matmul, f32 accumulate;
    # bias add + ReLU on the VPU in f32.
    h1 = jnp.dot(w1_ref[...], xT_ref[...],
                 preferred_element_type=jnp.float32) + b1_ref[...]
    h1 = jnp.maximum(h1, 0.0)

    # Layer 2: h2^T = W2 @ h1^T -> (H, TB).
    h2 = jnp.dot(w2_ref[...], h1.astype(jnp.bfloat16),
                 preferred_element_type=jnp.float32) + b2_ref[...]
    h2 = jnp.maximum(h2, 0.0)

    # Layer 3: v = w3 @ h2^T -> (1, TB). Natural MXU orientation, result is already
    # lane-dense (batch on lanes) so the store is an unmasked full-lane vst.
    v = jnp.dot(w3_ref[...], h2.astype(jnp.bfloat16),
                preferred_element_type=jnp.float32)
    o_ref[...] = v + b3_ref[0]


def prepare_params(params):
    """One-time conversion of f32 PyTorch-layout params to the kernel layout.

    Call once and reuse: keeps weight casts out of the per-step forward path.
    """
    w1, b1, w2, b2, w3, b3 = params          # w: (out, in), b: (out,)
    return (
        w1.astype(jnp.bfloat16),             # (H, D)
        b1.reshape(-1, 1).astype(jnp.float32),   # (H, 1) -> broadcast over lanes
        w2.astype(jnp.bfloat16),             # (H, H)
        b2.reshape(-1, 1).astype(jnp.float32),   # (H, 1)
        w3.reshape(1, -1).astype(jnp.bfloat16),  # (1, H)
        b3.reshape(1).astype(jnp.float32),       # (1,) SMEM scalar
    )


def _choose_tile_b(batch, max_tile=2048):
    """Batch-adaptive tile: >=2 grid steps when possible (v7x dual-TC), multiple of
    128 lanes, capped at 2048 rows for v5e scoped-VMEM headroom."""
    half = -(-batch // 2)                      # ceil(B / 2)
    half = max(128, -(-half // 128) * 128)     # round up to 128-lane granularity
    return min(max_tile, half)


@partial(jax.jit, static_argnums=(2,))
def _forward_impl(x, prep, tile_b):
    w1, b1, w2, b2, w3, b3 = prep
    B, D = x.shape
    H = w1.shape[0]

    num_tiles = -(-B // tile_b)
    B_pad = num_tiles * tile_b

    # Single fused XLA op under jit: pad batch, transpose to batch-on-lanes, cast bf16.
    xT = jnp.pad(x, ((0, B_pad - B), (0, 0))).T.astype(jnp.bfloat16)   # (D, B_pad)

    out = pl.pallas_call(
        valuenet_kernel,
        out_shape=jax.ShapeDtypeStruct((1, B_pad), jnp.float32),
        grid_spec=pltpu.PrefetchScalarGridSpec(
            num_scalar_prefetch=0,
            grid=(num_tiles,),
            in_specs=[
                pl.BlockSpec((D, tile_b), lambda i: (0, i)),        # x^T tile over batch
                pl.BlockSpec((H, D), lambda i: (0, 0)),             # W1 (resident)
                pl.BlockSpec((H, 1), lambda i: (0, 0)),             # b1
                pl.BlockSpec((H, H), lambda i: (0, 0)),             # W2 (resident)
                pl.BlockSpec((H, 1), lambda i: (0, 0)),             # b2
                pl.BlockSpec((1, H), lambda i: (0, 0)),             # W3 row
                pl.BlockSpec(memory_space=pltpu.MemorySpace.SMEM),  # b3 scalar
            ],
            out_specs=pl.BlockSpec((1, tile_b), lambda i: (0, i)),  # lane-dense row
        ),
        compiler_params=pltpu.CompilerParams(
            dimension_semantics=("parallel",),
        ),
    )(xT, w1, b1, w2, b2, w3, b3)

    # (1, B_pad) -> (B, 1); fused with the pallas_call epilogue under jit.
    return out[0, :B].reshape(B, 1)


def value_net_forward(x, prep, *, tile_b=None):
    """x: (B, input_dim) float32. prep: output of prepare_params. Returns (B, 1) f32."""
    if tile_b is None:
        tile_b = _choose_tile_b(x.shape[0])
    assert tile_b % 128 == 0, "tile_b must be a multiple of 128 (lane granularity)"
    return _forward_impl(x, prep, tile_b)


def init_params(key, input_dim, hidden):
    """PyTorch-layout (out, in) params with nn.Linear's uniform(-1/sqrt(fan_in), ...) init."""
    ks = jax.random.split(key, 6)

    def lin(kw, kb, fan_in, fan_out):
        bound = float(fan_in) ** -0.5
        w = jax.random.uniform(kw, (fan_out, fan_in), jnp.float32, -bound, bound)
        b = jax.random.uniform(kb, (fan_out,), jnp.float32, -bound, bound)
        return w, b

    w1, b1 = lin(ks[0], ks[1], input_dim, hidden)
    w2, b2 = lin(ks[2], ks[3], hidden, hidden)
    w3, b3 = lin(ks[4], ks[5], hidden, 1)
    return (w1, b1, w2, b2, w3, b3)


def value_net_ref(x, params):
    """Pure-JAX reference mirroring the kernel's bf16-operand / f32-accumulate math."""
    w1, b1, w2, b2, w3, b3 = params
    xb = x.astype(jnp.bfloat16)
    h1 = jnp.maximum(
        jnp.dot(xb, w1.T.astype(jnp.bfloat16),
                preferred_element_type=jnp.float32) + b1, 0.0)
    h2 = jnp.maximum(
        jnp.dot(h1.astype(jnp.bfloat16), w2.T.astype(jnp.bfloat16),
                preferred_element_type=jnp.float32) + b2, 0.0)
    return jnp.dot(h2.astype(jnp.bfloat16), w3.T.astype(jnp.bfloat16),
                   preferred_element_type=jnp.float32) + b3


if __name__ == "__main__":
    key = jax.random.PRNGKey(0)
    k_x, k_p = jax.random.split(key)

    batch = 500          # not a multiple of the tile -> exercises the padding path
    input_dim = 16       # state dim
    hidden = 128         # module default hidden=128

    x = jax.random.normal(k_x, (batch, input_dim), jnp.float32)
    params = init_params(k_p, input_dim, hidden)
    prep = prepare_params(params)        # one-time bf16/layout conversion

    out = value_net_forward(x, prep)     # tile_b auto -> 256, grid=(2,): both v7x TCs busy
    out = jax.block_until_ready(out)

    ref = value_net_ref(x, params)
    assert out.shape == (batch, 1)
    assert jnp.allclose(out, ref, atol=5e-3, rtol=5e-3), "mismatch vs reference"

    print("KERNEL_OK")
</pallas_src>

<mosaic_0001>
module attributes {stable_mosaic.version = 11 : i64} {
  func.func @valuenet_kernel(%arg0: i32, %arg1: memref<16x256xbf16, #tpu.memory_space<vmem>>, %arg2: memref<128x16xbf16, #tpu.memory_space<vmem>>, %arg3: memref<128x1xf32, #tpu.memory_space<vmem>>, %arg4: memref<128x128xbf16, #tpu.memory_space<vmem>>, %arg5: memref<128x1xf32, #tpu.memory_space<vmem>>, %arg6: memref<1x128xbf16, #tpu.memory_space<vmem>>, %arg7: memref<1xf32, #tpu.memory_space<smem>>, %arg8: memref<1x256xf32, #tpu.memory_space<vmem>>) attributes {dimension_semantics = [#tpu.dimension_semantics<parallel>], iteration_bounds = array<i64: 2>, scalar_prefetch = 0 : i64, scratch_operands = 0 : i64, tpu.core_type = #tpu.core_type<tc>, window_params = [{transform_indices = @transform_0, window_bounds = array<i64: 16, 256>}, {pipeline_mode = #tpu.pipeline_mode<synchronous>, transform_indices = @transform_1, window_bounds = array<i64: 128, 16>}, {pipeline_mode = #tpu.pipeline_mode<synchronous>, transform_indices = @transform_2, window_bounds = array<i64: 128, 1>}, {pipeline_mode = #tpu.pipeline_mode<synchronous>, transform_indices = @transform_3, window_bounds = array<i64: 128, 128>}, {pipeline_mode = #tpu.pipeline_mode<synchronous>, transform_indices = @transform_4, window_bounds = array<i64: 128, 1>}, {pipeline_mode = #tpu.pipeline_mode<synchronous>, transform_indices = @transform_5, window_bounds = array<i64: 1, 128>}, {transform_indices = @transform_6, window_bounds = array<i64: 1>}, {transform_indices = @transform_7, window_bounds = array<i64: 1, 256>}]} {
    %c0 = arith.constant 0 : index
    %c0_0 = arith.constant 0 : index
    %0 = vector.load %arg2[%c0, %c0_0] : memref<128x16xbf16, #tpu.memory_space<vmem>>, vector<128x16xbf16>
    %c0_1 = arith.constant 0 : index
    %c0_2 = arith.constant 0 : index
    %1 = vector.load %arg1[%c0_1, %c0_2] : memref<16x256xbf16, #tpu.memory_space<vmem>>, vector<16x256xbf16>
    %cst = arith.constant dense<0.000000e+00> : vector<128x256xf32>
    %2 = tpu.matmul %0, %1, %cst {dimension_numbers = #tpu.dot_dimension_numbers<[1], [0], [0], [1], [0, 0, 1, 1], [], []>} : vector<128x16xbf16>, vector<16x256xbf16>, vector<128x256xf32> -> vector<128x256xf32>
    %c0_3 = arith.constant 0 : index
    %c0_4 = arith.constant 0 : index
    %3 = vector.load %arg3[%c0_3, %c0_4] : memref<128x1xf32, #tpu.memory_space<vmem>>, vector<128x1xf32>
    %4 = vector.broadcast %3 : vector<128x1xf32> to vector<128x256xf32>
    %5 = arith.addf %2, %4 : vector<128x256xf32>
    %cst_5 = arith.constant 0.000000e+00 : f32
    %6 = vector.broadcast %cst_5 : f32 to vector<128x256xf32>
    %7 = arith.maximumf %5, %6 : vector<128x256xf32>
    %c0_6 = arith.constant 0 : index
    %c0_7 = arith.constant 0 : index
    %8 = vector.load %arg4[%c0_6, %c0_7] : memref<128x128xbf16, #tpu.memory_space<vmem>>, vector<128x128xbf16>
    %9 = arith.truncf %7 : vector<128x256xf32> to vector<128x256xbf16>
    %cst_8 = arith.constant dense<0.000000e+00> : vector<128x256xf32>
    %10 = tpu.matmul %8, %9, %cst_8 {dimension_numbers = #tpu.dot_dimension_numbers<[1], [0], [0], [1], [0, 0, 1, 1], [], []>} : vector<128x128xbf16>, vector<128x256xbf16>, vector<128x256xf32> -> vector<128x256xf32>
    %c0_9 = arith.constant 0 : index
    %c0_10 = arith.constant 0 : index
    %11 = vector.load %arg5[%c0_9, %c0_10] : memref<128x1xf32, #tpu.memory_space<vmem>>, vector<128x1xf32>
    %12 = vector.broadcast %11 : vector<128x1xf32> to vector<128x256xf32>
    %13 = arith.addf %10, %12 : vector<128x256xf32>
    %cst_11 = arith.constant 0.000000e+00 : f32
    %14 = vector.broadcast %cst_11 : f32 to vector<128x256xf32>
    %15 = arith.maximumf %13, %14 : vector<128x256xf32>
    %c0_12 = arith.constant 0 : index
    %c0_13 = arith.constant 0 : index
    %16 = vector.load %arg6[%c0_12, %c0_13] : memref<1x128xbf16, #tpu.memory_space<vmem>>, vector<1x128xbf16>
    %17 = arith.truncf %15 : vector<128x256xf32> to vector<128x256xbf16>
    %cst_14 = arith.constant dense<0.000000e+00> : vector<1x256xf32>
    %18 = tpu.matmul %16, %17, %cst_14 {dimension_numbers = #tpu.dot_dimension_numbers<[1], [0], [0], [1], [0, 0, 1, 1], [], []>} : vector<1x128xbf16>, vector<128x256xbf16>, vector<1x256xf32> -> vector<1x256xf32>
    %c0_15 = arith.constant 0 : index
    %19 = memref.load %arg7[%c0_15] : memref<1xf32, #tpu.memory_space<smem>>
    %20 = vector.broadcast %19 : f32 to vector<1x256xf32>
    %21 = arith.addf %18, %20 : vector<1x256xf32>
    %c0_16 = arith.constant 0 : index
    %c0_17 = arith.constant 0 : index
    %22 = vector.load %arg8[%c0_16, %c0_17] : memref<1x256xf32, #tpu.memory_space<vmem>>, vector<1x256xf32>
    tpu.vector_store %arg8[%c0_16, %c0_17], %21 {strides = array<i32>} : memref<1x256xf32, #tpu.memory_space<vmem>>, vector<1x256xf32>,
    return
  }
  func.func @transform_0(%arg0: i32) -> (i32, i32) {
    %c0_i32 = arith.constant 0 : i32
    %c0_i32_0 = arith.constant 0 : i32
    return %c0_i32, %arg0 : i32, i32
  }
  func.func @transform_1(%arg0: i32) -> (i32, i32) {
    %c0_i32 = arith.constant 0 : i32
    %c0_i32_0 = arith.constant 0 : i32
    %c0_i32_1 = arith.constant 0 : i32
    return %c0_i32, %c0_i32_0 : i32, i32
  }
  func.func @transform_2(%arg0: i32) -> (i32, i32) {
    %c0_i32 = arith.constant 0 : i32
    %c0_i32_0 = arith.constant 0 : i32
    %c0_i32_1 = arith.constant 0 : i32
    return %c0_i32, %c0_i32_0 : i32, i32
  }
  func.func @transform_3(%arg0: i32) -> (i32, i32) {
    %c0_i32 = arith.constant 0 : i32
    %c0_i32_0 = arith.constant 0 : i32
    %c0_i32_1 = arith.constant 0 : i32
    return %c0_i32, %c0_i32_0 : i32, i32
  }
  func.func @transform_4(%arg0: i32) -> (i32, i32) {
    %c0_i32 = arith.constant 0 : i32
    %c0_i32_0 = arith.constant 0 : i32
    %c0_i32_1 = arith.constant 0 : i32
    return %c0_i32, %c0_i32_0 : i32, i32
  }
  func.func @transform_5(%arg0: i32) -> (i32, i32) {
    %c0_i32 = arith.constant 0 : i32
    %c0_i32_0 = arith.constant 0 : i32
    %c0_i32_1 = arith.constant 0 : i32
    return %c0_i32, %c0_i32_0 : i32, i32
  }
  func.func @transform_6(%arg0: i32) -> i32 {
    %c0_i32 = arith.constant 0 : i32
    %c0_i32_0 = arith.constant 0 : i32
    return %c0_i32 : i32
  }
  func.func @transform_7(%arg0: i32) -> (i32, i32) {
    %c0_i32 = arith.constant 0 : i32
    %c0_i32_0 = arith.constant 0 : i32
    return %c0_i32, %arg0 : i32, i32
  }
}

</mosaic_0001>

<bundles_post_ra>
// kernel: _forward_impl.1
= control target key start
LH: loop header
LB: loop body
LE: loop exit
PB: predicated region body
PF: predicated region fallthrough
CT: control target
= control target key end

     0   :  { %s1600_s0 = inlined_call_operand.vmem [shape: bf16[16,512], index: 0, kind: input, shape index: {}]   ;;  %s1601_s1 = inlined_call_operand.vmem [shape: bf16[128,16], index: 1, kind: input, shape index: {}]   ;;  %s1602_s2 = inlined_call_operand.vmem [shape: f32[128,1], index: 2, kind: input, shape index: {}]   ;;  %s1603_s3 = inlined_call_operand.vmem [shape: bf16[128,128], index: 3, kind: input, shape index: {}]   ;;  %s1604_s4 = inlined_call_operand.vmem [shape: f32[128,1], index: 4, kind: input, shape index: {}]   ;;  %s1605_s5 = inlined_call_operand.vmem [shape: bf16[1,128], index: 5, kind: input, shape index: {}]   ;;  %s1606_s6 = inlined_call_operand.<no memory space> [shape: f32[1], index: 6, kind: input, shape index: {}]   ;;  %s1607_s7 = inlined_call_operand.vmem [shape: f32[1,512], index: 7, kind: output, shape index: {}]  }
   0x1   :  { %12 = sst [smem:[#allocation2]] %s1606_s6 }
   0x2   :  { %s1273_s26 = smov 0   ;;  %s1275_s27 = smov 0  }
   0x3   :  { %s1277_s28 = smov 0  }
   0x4 LB: > { %s1058_s6 = sadd.s32 4294967295, %s1227_s28   ;;  %s1290_s29 = sadd.s32 1, %s1227_s28   ;;  %s1227_s28 = sphi %s1277_s28, %s1610_s28   ;;  %s1223_s27 = sphi %s1275_s27, %s1609_s27   ;;  %s1219_s26 = sphi %s1273_s26, %s1608_s26  }
   0x5   : > { %s22_s30 = ssub.s32 %s1227_s28, %s1290_s29  ;;  %s25_s8 = sadd.s32 1, %s1223_s27 }
   0x6   : > { %p23_p0 = scmp.eq.s32.totalorder %s22_s30, 0  ;;  %p32_p1 = scmp.ne.s32.totalorder %s1223_s27, %s1219_s26 }
   0x7   : > { %p33_p2 = scmp.eq.s32.totalorder %s1227_s28, 0  ;;  %p1061_p4 = scmp.ge.s32.totalorder %s1227_s28, 2 }
   0x8   : > { %s1299_s9 = scalar_select %p23_p0, %s1223_s27, %s25_s8  }
   0x9   : > { %p34_p3 = por %p33_p2, %p32_p1  ;;  %228 = sbr.rel (%p1061_p4) target bundleno = 20 (0x14), region = 40 }
   0xe   : > { %231 = sbr.rel (!%p34_p3) target bundleno = 20 (0x14), region = 44  ;;  %s233_s10 = sand.u32 (%p34_p3), 1, %s1223_s27  }
   0xf   : > { %s1158_s11 = sshll.u32 (%p34_p3), %s1227_s28, 3  ;;  %s1062_s12 = sshll.u32 (%p34_p3), %s233_s10, 4 }
  0x10   : > { %s238_s15 = scalar_lea.vmem (%p34_p3), %s1600_s0, %s1158_s11  ;;  %s235_s16 = scalar_lea.vmem (%p34_p3), [#allocation3], %s1062_s12 }
  0x11   : > { %v269_v0 = vld [vmem:[%s238_s15] sm:$0xff] (%p34_p3)  ;;  %v271_v1 = vld [vmem:[%s238_s15 + $0x10] sm:$0xff] (%p34_p3) }
  0x12   : > { %270 = vst [vmem:[%s235_s16] sm:$0xff] (%p34_p3), %v269_v0 }
  0x13   : > { %272 = vst [vmem:[%s235_s16 + $0x8] sm:$0xff] %v271_v1 }
  0x14 PF: > { %p1065_p5 = scmp.ge.s32.totalorder %s1227_s28, 1  ;;  %p277_p6 = scmp.lt.s32.totalorder %s1227_s28, 3 }
  0x16   : > { %p278_p7 = pnand %p1065_p5, %p277_p6 }
  0x17   : > { %s284_s19 = sand.u32 (!%p278_p7), 1, %s1219_s26   ;;  %s963_s23 = sld [smem:[#allocation2]] (!%p278_p7) }
  0x18   : > { %281 = sbr.rel (%p278_p7) target bundleno = 743 (0x2e7), region = 82  ;;  %s1066_s20 = sshll.u32 (!%p278_p7), %s284_s19, 4 }
  0x19   : > { %s286_s25 = scalar_lea.vmem (!%p278_p7), [#allocation3], %s1066_s20  ;;  %s1067_s24 = sshll.u32 (!%p278_p7), %s1058_s6, 1 }
  0x1a   : > { %p316_p8 = scmp.lt.s32.totalorder (!%p278_p7), %s1067_s24, 3 }
  0x1d   : > { %v353_v2 = vld [vmem:[%s1602_s2 + $0x70] sm:$0xff]  ;;  %v1229_v3 = vmov 0   ;;  %v351_v4 = vld [vmem:[%s1602_s2 + $0x60] sm:$0xff]  ;;  %v1168_v7 = vld [vmem:[%s286_s25 + $0x4] sm:$0xf0]  ;;  %vm485_vm0 = vcmask 130048  }
  0x1e   : > { %1202 = vset.pattern.permute.xlu0 %v1229_v3  ;;  %1204 = vset.pattern.permute.xlu2 %v1229_v3  ;;  %v349_v5 = vld [vmem:[%s1602_s2 + $0x50] sm:$0xff]  ;;  %v1104_v10 = vld [vmem:[%s286_s25 + $0x8] sm:$0xf0]  ;;  %v1159_v12 = vld [vmem:[%s1601_s1] sm:$0xff]  ;;  %s1612_s24 = smov (!%p316_p8, %s1067_s24), 3  ;;  %vm994_vm1 = vcmask 1040384  }
  0x1f   : > { %427 = vperm.xlu0 %1202, %v353_v2   ;;  %1203 = vset.pattern.permute.xlu1 %v1229_v3  ;;  %v1102_v6 = vld [vmem:[%s286_s25] sm:$0xf]  ;;  %v1167_v8 = vld [vmem:[%s286_s25 + $0x4] sm:$0xf]  ;;  %v354_v13 = vld [vmem:[%s1602_s2 + $0x78] sm:$0xff]  ;;  %s318_s30 = scalar_lea.vmem %s1607_s7, %s1612_s24 }
  0x20   : > { %417 = vperm.xlu1 %1203, %v351_v4   ;;  %407 = vperm.xlu2 %1204, %v349_v5   ;;  %v1103_v9 = vor.u32 %v1168_v7, %v1102_v6  ;;  %v1107_v11 = vor.u32 %v1167_v8, %v1104_v10  ;;  %v352_v14 = vld [vmem:[%s1602_s2 + $0x68] sm:$0xff]  ;;  %v350_v15 = vld [vmem:[%s1602_s2 + $0x58] sm:$0xff]  ;;  %v347_v16 = vld [vmem:[%s1602_s2 + $0x40] sm:$0xff] }
  0x21   : > { %v348_v17 = vld [vmem:[%s1602_s2 + $0x48] sm:$0xff]  ;;  %v345_v18 = vld [vmem:[%s1602_s2 + $0x30] sm:$0xff]  ;;  %v346_v20 = vld [vmem:[%s1602_s2 + $0x38] sm:$0xff] }
  0x22   : > { %517 = vmatpush.bf16.msra.mxu0 %v1103_v9  ;;  %566 = vmatpush.bf16.msra.mxu1 %v1107_v11  ;;  %v1160_v19 = vld [vmem:[%s1601_s1 + $0x8] sm:$0xff]  ;;  %v343_v22 = vld [vmem:[%s1602_s2 + $0x20] sm:$0xff]  ;;  %v341_v23 = vld [vmem:[%s1602_s2 + $0x10] sm:$0xff] }
  0x23   : > { %v344_v21 = vld [vmem:[%s1602_s2 + $0x28] sm:$0xff]  ;;  %v342_v24 = vld [vmem:[%s1602_s2 + $0x18] sm:$0xff]  ;;  %v339_v25 = vld [vmem:[%s1602_s2] sm:$0xff] }
  0x24   : > { %v1161_v26 = vld [vmem:[%s1601_s1 + $0x10] sm:$0xff]  ;;  %v340_v27 = vld [vmem:[%s1602_s2 + $0x8] sm:$0xff]  ;;  %v1162_v28 = vld [vmem:[%s1601_s1 + $0x18] sm:$0xff] }
  0x25   : > { %1108 = vmatmul.msk.bf16.vlgmr.msra.gmra.mxu0 %vm485_vm0, %v1159_v12  ;;  %1116 = vmatmul.msk.bf16.vlgmr.msra.gmra.mxu1 %vm485_vm0, %v1159_v12  ;;  %v686_v29 = vld [vmem:[%s1604_s4 + $0x70] sm:$0xff]  ;;  %v684_v30 = vld [vmem:[%s1604_s4 + $0x60] sm:$0xff]  ;;  %v685_v31 = vld [vmem:[%s1604_s4 + $0x68] sm:$0xff] }
  0x26   : > { %v683_v32 = vld [vmem:[%s1604_s4 + $0x58] sm:$0xff]  ;;  %v1163_v33 = vld [vmem:[%s1601_s1 + $0x20] sm:$0xff]  ;;  %v678_v35 = vld [vmem:[%s1604_s4 + $0x30] sm:$0xff] }
  0x27   : > { %432 = vperm.xlu0 %1202, %v354_v13   ;;  %v680_v34 = vld [vmem:[%s1604_s4 + $0x40] sm:$0xff]  ;;  %v679_v36 = vld [vmem:[%s1604_s4 + $0x38] sm:$0xff]  ;;  %v677_v37 = vld [vmem:[%s1604_s4 + $0x28] sm:$0xff] }
  0x28   : > { %422 = vperm.xlu1 %1203, %v352_v14   ;;  %412 = vperm.xlu2 %1204, %v350_v15   ;;  %v1164_v38 = vld [vmem:[%s1601_s1 + $0x28] sm:$0xff]  ;;  %v674_v39 = vld [vmem:[%s1604_s4 + $0x10] sm:$0xff]  ;;  %v672_v40 = vld [vmem:[%s1604_s4] sm:$0xff] }
  0x29   : > { %v687_v41 = vld [vmem:[%s1604_s4 + $0x78] sm:$0xff]  ;;  %v673_v42 = vld [vmem:[%s1604_s4 + $0x8] sm:$0xff]  ;;  %v1165_v43 = vld [vmem:[%s1601_s1 + $0x30] sm:$0xff] }
  0x2a   : > { %v682_v44 = vld [vmem:[%s1604_s4 + $0x50] sm:$0xff]  ;;  %v681_v46 = vld [vmem:[%s1604_s4 + $0x48] sm:$0xff]  ;;  %v1166_v48 = vld [vmem:[%s1601_s1 + $0x38] sm:$0xff] }
  0x2b   : > { %v676_v50 = vld [vmem:[%s1604_s4 + $0x20] sm:$0xff]  ;;  %v675_v54 = vld [vmem:[%s1604_s4 + $0x18] sm:$0xff] }
  0x2f   : > { %397 = vperm.xlu0 %1202, %v347_v16  }
  0x30   : > { %402 = vperm.xlu1 %1203, %v348_v17   ;;  %387 = vperm.xlu2 %1204, %v345_v18  }
  0x35   : > { %1109 = vmatmul.msk.bf16.gmra.mxu0 %vm485_vm0, %v1160_v19  ;;  %1117 = vmatmul.msk.bf16.gmra.mxu1 %vm485_vm0, %v1160_v19 }
  0x37   : > { %392 = vperm.xlu0 %1202, %v346_v20  }
  0x38   : > { %382 = vperm.xlu2 %1204, %v344_v21   ;;  %377 = vperm.xlu1 %1203, %v343_v22  }
  0x3f   : > { %367 = vperm.xlu0 %1202, %v341_v23  }
  0x40   : > { %372 = vperm.xlu1 %1203, %v342_v24   ;;  %357 = vperm.xlu2 %1204, %v339_v25  }
  0x45   : > { %1110 = vmatmul.msk.bf16.gmra.mxu0 %vm485_vm0, %v1161_v26  ;;  %1118 = vmatmul.msk.bf16.gmra.mxu1 %vm485_vm0, %v1161_v26 }
  0x47   : > { %362 = vperm.xlu0 %1202, %v340_v27  }
  0x48   : > { %760 = vperm.xlu1 %1203, %v686_v29   ;;  %765 = vperm.xlu2 %1204, %v687_v41  }
  0x4f   : > { %750 = vperm.xlu0 %1202, %v684_v30  }
  0x50   : > { %755 = vperm.xlu1 %1203, %v685_v31   ;;  %740 = vperm.xlu2 %1204, %v682_v44  }
  0x55   : > { %1111 = vmatmul.msk.bf16.gmra.mxu0 %vm485_vm0, %v1162_v28  ;;  %1119 = vmatmul.msk.bf16.gmra.mxu1 %vm485_vm0, %v1162_v28 }
  0x57   : > { %745 = vperm.xlu0 %1202, %v683_v32  }
  0x58   : > { %730 = vperm.xlu1 %1203, %v680_v34   ;;  %735 = vperm.xlu2 %1204, %v681_v46  }
  0x5f   : > { %720 = vperm.xlu0 %1202, %v678_v35  }
  0x60   : > { %725 = vperm.xlu1 %1203, %v679_v36   ;;  %710 = vperm.xlu2 %1204, %v676_v50  }
  0x65   : > { %1112 = vmatmul.msk.bf16.gmra.mxu0 %vm485_vm0, %v1163_v33  ;;  %1120 = vmatmul.msk.bf16.gmra.mxu1 %vm485_vm0, %v1163_v33 }
  0x67   : > { %715 = vperm.xlu0 %1202, %v677_v37  }
  0x68   : > { %700 = vperm.xlu1 %1203, %v674_v39   ;;  %705 = vperm.xlu2 %1204, %v675_v54  }
  0x6f   : > { %690 = vperm.xlu0 %1202, %v672_v40  }
  0x70   : > { %695 = vperm.xlu1 %1203, %v673_v42  }
  0x75   : > { %1113 = vmatmul.msk.bf16.gmra.mxu0 %vm485_vm0, %v1164_v38  ;;  %1121 = vmatmul.msk.bf16.gmra.mxu1 %vm485_vm0, %v1164_v38 }
  0x7a   : > { %v1432_v45 = vpop.permute.xlu2 %407 }
  0x82   : > { %v1447_v51 = vpop.permute.xlu2 %412 }
  0x85   : > { %1114 = vmatmul.msk.bf16.gmra.mxu0 %vm485_vm0, %v1165_v43  ;;  %1122 = vmatmul.msk.bf16.gmra.mxu1 %vm485_vm0, %v1165_v43 }
  0x8a   : > { %v388_v55 = vpop.permute.xlu2 %387 }
  0x91   : > { %v1437_v47 = vpop.permute.xlu0 %427 }
  0x92   : > { %v1442_v49 = vpop.permute.xlu1 %417  ;;  %v383_v61 = vpop.permute.xlu2 %382 }
  0x95   : > { %1115 = vmatmul.msk.bf16.gmra.mxu0 %vm485_vm0, %v1166_v48  ;;  %1123 = vmatmul.msk.bf16.gmra.mxu1 %vm485_vm0, %v1166_v48 }
  0x99   : > { %v1451_v52 = vpop.permute.xlu0 %432 }
  0x9a   : > { %v1453_v53 = vpop.permute.xlu1 %422  ;;  %v358_v3 = vpop.permute.xlu2 %357 }
  0xa1   : > { %v1458_v56 = vpop.permute.xlu0 %397 }
  0xa2   : > { %v519_v57 = vpop.f32.mrf.mxu0  ;;  %v568_v58 = vpop.f32.mrf.mxu1 }
  0xa3   : > { %v1460_v59 = vpop.permute.xlu1 %402  ;;  %v520_v5 = vadd.f32 %v519_v57, %v358_v3  ;;  %v569_v6 = vadd.f32 %v568_v58, %v358_v3 }
  0xa5   : > { %v608_v12 = vmax.f32 %v520_v5, 0.0  ;;  %v609_v15 = vmax.f32 %v569_v6, 0.0 }
  0xa9   : > { %v393_v60 = vpop.permute.xlu0 %392 }
  0xaa   : > { %v521_v62 = vpop.f32.mrf.mxu0  ;;  %v570_v63 = vpop.f32.mrf.mxu1 }
  0xab   : > { %v378_v0 = vpop.permute.xlu1 %377 }
  0xb1   : > { %v368_v1 = vpop.permute.xlu0 %367 }
  0xb2   : > { %v524_v2 = vpop.f32.mrf.mxu0  ;;  %v573_v4 = vpop.f32.mrf.mxu1 }
  0xb3   : > { %v373_v8 = vpop.permute.xlu1 %372  ;;  %v525_v9 = vadd.f32 %v524_v2, %v368_v1  ;;  %v574_v13 = vadd.f32 %v573_v4, %v368_v1 }
  0xb5   : > { %v612_v21 = vmax.f32 %v525_v9, 0.0  ;;  %v613_v25 = vmax.f32 %v574_v13, 0.0 }
  0xb9   : > { %v363_v7 = vpop.permute.xlu0 %362 }
  0xba   : > { %v522_v10 = vadd.f32 %v521_v62, %v363_v7  ;;  %v571_v11 = vadd.f32 %v570_v63, %v363_v7  ;;  %v526_v14 = vpop.f32.mrf.mxu0  ;;  %v575_v19 = vpop.f32.mrf.mxu1 }
  0xbb   : > { %v527_v18 = vadd.f32 %v526_v14, %v373_v8  ;;  %v576_v20 = vadd.f32 %v575_v19, %v373_v8 }
  0xbc   : > { %v610_v16 = vmax.f32 %v522_v10, 0.0  ;;  %v611_v17 = vmax.f32 %v571_v11, 0.0 }
  0xbd   : > { %v614_v22 = vmax.f32 %v527_v18, 0.0  ;;  %v615_v26 = vmax.f32 %v576_v20, 0.0 }
  0xbe   : > { %v1462_v23 = vpack.c.bf16 %v610_v16, %v608_v12  ;;  %v1464_v24 = vpack.c.bf16 %v611_v17, %v609_v15 }
  0xbf   : > { %v1466_v27 = vpack.c.bf16 %v614_v22, %v612_v21  ;;  %v1468_v28 = vpack.c.bf16 %v615_v26, %v613_v25 }
  0xc2   : > { %v529_v29 = vpop.f32.mrf.mxu0  ;;  %v578_v30 = vpop.f32.mrf.mxu1 }
  0xc3   : > { %v530_v31 = vadd.f32 %v529_v29, %v378_v0  ;;  %v579_v32 = vadd.f32 %v578_v30, %v378_v0 }
  0xc5   : > { %v616_v37 = vmax.f32 %v530_v31, 0.0  ;;  %v617_v39 = vmax.f32 %v579_v32, 0.0 }
  0xca   : > { %v531_v33 = vpop.f32.mrf.mxu0  ;;  %v580_v35 = vpop.f32.mrf.mxu1 }
  0xcb   : > { %v532_v34 = vadd.f32 %v531_v33, %v383_v61  ;;  %v581_v36 = vadd.f32 %v580_v35, %v383_v61 }
  0xcd   : > { %v618_v38 = vmax.f32 %v532_v34, 0.0  ;;  %v619_v40 = vmax.f32 %v581_v36, 0.0 }
  0xcf   : > { %v1470_v41 = vpack.c.bf16 %v618_v38, %v616_v37  ;;  %v1472_v42 = vpack.c.bf16 %v619_v40, %v617_v39 }
  0xd2   : > { %v534_v43 = vpop.f32.mrf.mxu0  ;;  %v583_v44 = vpop.f32.mrf.mxu1 }
  0xd3   : > { %v535_v46 = vadd.f32 %v534_v43, %v388_v55  ;;  %v584_v48 = vadd.f32 %v583_v44, %v388_v55 }
  0xd5   : > { %v620_v62 = vmax.f32 %v535_v46, 0.0  ;;  %v621_v0 = vmax.f32 %v584_v48, 0.0 }
  0xda   : > { %v536_v50 = vpop.f32.mrf.mxu0  ;;  %v585_v57 = vpop.f32.mrf.mxu1 }
  0xdb   : > { %v537_v54 = vadd.f32 %v536_v50, %v393_v60  ;;  %v586_v58 = vadd.f32 %v585_v57, %v393_v60 }
  0xdd   : > { %v622_v63 = vmax.f32 %v537_v54, 0.0  ;;  %v623_v61 = vmax.f32 %v586_v58, 0.0 }
  0xdf   : > { %v1474_v1 = vpack.c.bf16 %v622_v63, %v620_v62  ;;  %v1476_v2 = vpack.c.bf16 %v623_v61, %v621_v0 }
  0xe2   : > { %v539_v3 = vpop.f32.mrf.mxu0  ;;  %v588_v4 = vpop.f32.mrf.mxu1 }
  0xe3   : > { %v589_v54 = vadd.f32 %v588_v4, %v1458_v56 }
  0xe5   : > { %v625_v61 = vmax.f32 %v589_v54, 0.0 }
  0xea   : > { %v541_v5 = vpop.f32.mrf.mxu0  ;;  %v590_v6 = vpop.f32.mrf.mxu1 }
  0xeb   : > { %v591_v44 = vadd.f32 %v590_v6, %v1460_v59  ;;  %v1176_v6 = vld [vmem:[%s1603_s3 + $0x38] sm:$0xff] }
  0xed   : > { %v627_v62 = vmax.f32 %v591_v44, 0.0 }
  0xf2   : > { %v544_v7 = vpop.f32.mrf.mxu0  ;;  %v593_v8 = vpop.f32.mrf.mxu1 }
  0xfa   : > { %v546_v9 = vpop.f32.mrf.mxu0  ;;  %v595_v55 = vpop.f32.mrf.mxu1 }
  0xfb   : > { %v596_v35 = vadd.f32 %v595_v55, %v1447_v51 }
  0xfd   : > { %v631_v46 = vmax.f32 %v596_v35, 0.0 }
 0x102   : > { %v549_v10 = vpop.f32.mrf.mxu0  ;;  %v598_v11 = vpop.f32.mrf.mxu1 }
 0x103   : > { %v550_v25 = vadd.f32 %v549_v10, %v1442_v49  ;;  %v599_v30 = vadd.f32 %v598_v11, %v1442_v49  ;;  %v542_v49 = vadd.f32 %v541_v5, %v1460_v59  ;;  %v665_v59 = vpack.c.bf16 %v627_v62, %v625_v61 }
 0x105   : > { %v632_v38 = vmax.f32 %v550_v25, 0.0  ;;  %v633_v39 = vmax.f32 %v599_v30, 0.0  ;;  %v626_v58 = vmax.f32 %v542_v49, 0.0 }
 0x10a   : > { %v551_v12 = vpop.f32.mrf.mxu0  ;;  %v600_v60 = vpop.f32.mrf.mxu1 }
 0x10b   : > { %v552_v18 = vadd.f32 %v551_v12, %v1453_v53  ;;  %v601_v21 = vadd.f32 %v600_v60, %v1453_v53  ;;  %v545_v53 = vadd.f32 %v544_v7, %v1432_v45 }
 0x10d   : > { %v634_v33 = vmax.f32 %v552_v18, 0.0  ;;  %v635_v36 = vmax.f32 %v601_v21, 0.0  ;;  %v628_v50 = vmax.f32 %v545_v53, 0.0 }
 0x10f   : > { %v668_v43 = vpack.c.bf16 %v634_v33, %v632_v38  ;;  %v669_v48 = vpack.c.bf16 %v635_v36, %v633_v39 }
 0x112   : > { %v554_v13 = vpop.f32.mrf.mxu0  ;;  %v603_v14 = vpop.f32.mrf.mxu1 }
 0x113   : > { %v555_v15 = vadd.f32 %v554_v13, %v1437_v47  ;;  %v604_v16 = vadd.f32 %v603_v14, %v1437_v47  ;;  %v547_v47 = vadd.f32 %v546_v9, %v1447_v51  ;;  %v540_v51 = vadd.f32 %v539_v3, %v1458_v56  ;;  %v1169_v56 = vld [vmem:[%s1603_s3] sm:$0xff] }
 0x115   : > { %v636_v26 = vmax.f32 %v555_v15, 0.0  ;;  %v637_v31 = vmax.f32 %v604_v16, 0.0  ;;  %v630_v40 = vmax.f32 %v547_v47, 0.0  ;;  %v624_v0 = vmax.f32 %v540_v51, 0.0 }
 0x117   : > { %v664_v5 = vpack.c.bf16 %v626_v58, %v624_v0 }
 0x11a   : > { %v556_v17 = vpop.f32.mrf.mxu0  ;;  %v605_v20 = vpop.f32.mrf.mxu1 }
 0x11b   : > { %v557_v19 = vadd.f32 %v556_v17, %v1451_v52  ;;  %v606_v22 = vadd.f32 %v605_v20, %v1451_v52  ;;  %v594_v52 = vadd.f32 %v593_v8, %v1432_v45  ;;  %v666_v45 = vpack.c.bf16 %v630_v40, %v628_v50  ;;  %v1536_v8 = vpop.permute.xlu2 %765 }
 0x11d   : > { %v638_v29 = vmax.f32 %v557_v19, 0.0  ;;  %v639_v32 = vmax.f32 %v606_v22, 0.0  ;;  %v629_v57 = vmax.f32 %v594_v52, 0.0 }
 0x11f   : > { %v670_v34 = vpack.c.bf16 %v638_v29, %v636_v26  ;;  %v671_v37 = vpack.c.bf16 %v639_v32, %v637_v31  ;;  %v667_v63 = vpack.c.bf16 %v631_v46, %v629_v57 }
 0x121   : > { %816 = vmatpush.bf16.msra.mxu2 %v670_v34  ;;  %865 = vmatpush.bf16.msra.mxu3 %v671_v37 }
 0x123   : > { %v1538_v10 = vpop.permute.xlu2 %740 }
 0x125   : > { %817 = vmatpush.bf16.msra.mxu2 %v668_v43  ;;  %866 = vmatpush.bf16.msra.mxu3 %v669_v48 }
 0x129   : > { %818 = vmatpush.bf16.msra.mxu2 %v666_v45  ;;  %867 = vmatpush.bf16.msra.mxu3 %v667_v63 }
 0x12b   : > { %v1540_v14 = vpop.permute.xlu2 %735 }
 0x12d   : > { %819 = vmatpush.bf16.msra.mxu2 %v664_v5  ;;  %868 = vmatpush.bf16.msra.mxu3 %v665_v59 }
 0x131   : > { %820 = vmatpush.bf16.msra.mxu2 %v1474_v1  ;;  %869 = vmatpush.bf16.msra.mxu3 %v1476_v2  ;;  %v1175_v1 = vld [vmem:[%s1603_s3 + $0x30] sm:$0xff]  ;;  %v1525_v2 = vpop.permute.xlu0 %750 }
 0x133   : > { %v711_v32 = vpop.permute.xlu2 %710 }
 0x135   : > { %821 = vmatpush.bf16.msra.mxu2 %v1470_v41  ;;  %870 = vmatpush.bf16.msra.mxu3 %v1472_v42  ;;  %v1170_v41 = vld [vmem:[%s1603_s3 + $0x8] sm:$0xff]  ;;  %v1520_v42 = vpop.permute.xlu1 %760 }
 0x139   : > { %822 = vmatpush.bf16.msra.mxu2 %v1466_v27  ;;  %871 = vmatpush.bf16.msra.mxu3 %v1468_v28  ;;  %v1171_v27 = vld [vmem:[%s1603_s3 + $0x10] sm:$0xff]  ;;  %v1174_v28 = vld [vmem:[%s1603_s3 + $0x28] sm:$0xff]  ;;  %v1529_v4 = vpop.permute.xlu0 %745 }
 0x13b   : > { %v706_v36 = vpop.permute.xlu2 %705 }
 0x13d   : > { %823 = vmatpush.bf16.msra.mxu2 %v1462_v23  ;;  %872 = vmatpush.bf16.msra.mxu3 %v1464_v24  ;;  %v1172_v23 = vld [vmem:[%s1603_s3 + $0x18] sm:$0xff]  ;;  %v1173_v24 = vld [vmem:[%s1603_s3 + $0x20] sm:$0xff]  ;;  %v1527_v3 = vpop.permute.xlu1 %755 }
 0x140   : > { %824 = vmatmul.bf16.vlgmr.msra.gmra.mxu2 %v1169_v56  ;;  %873 = vmatmul.bf16.vlgmr.msra.gmra.mxu3 %v1169_v56 }
 0x141   : > { %v721_v9 = vpop.permute.xlu0 %720 }
 0x145   : > { %v1534_v7 = vpop.permute.xlu1 %730 }
 0x149   : > { %v716_v11 = vpop.permute.xlu0 %715 }
 0x14d   : > { %v726_v55 = vpop.permute.xlu1 %725 }
 0x150   : > { %829 = vmatmul.bf16.gmra.mxu2 %v1170_v41  ;;  %878 = vmatmul.bf16.gmra.mxu3 %v1170_v41 }
 0x151   : > { %v691_v15 = vpop.permute.xlu0 %690 }
 0x155   : > { %v701_v12 = vpop.permute.xlu1 %700 }
 0x15d   : > { %v696_v17 = vpop.permute.xlu1 %695 }
 0x160   : > { %834 = vmatmul.bf16.gmra.mxu2 %v1171_v27  ;;  %883 = vmatmul.bf16.gmra.mxu3 %v1171_v27 }
 0x170   : > { %839 = vmatmul.bf16.gmra.mxu2 %v1172_v23  ;;  %888 = vmatmul.bf16.gmra.mxu3 %v1172_v23 }
 0x180   : > { %844 = vmatmul.bf16.gmra.mxu2 %v1173_v24  ;;  %893 = vmatmul.bf16.gmra.mxu3 %v1173_v24 }
 0x190   : > { %849 = vmatmul.bf16.gmra.mxu2 %v1174_v28  ;;  %898 = vmatmul.bf16.gmra.mxu3 %v1174_v28 }
 0x1a0   : > { %854 = vmatmul.bf16.gmra.mxu2 %v1175_v1  ;;  %903 = vmatmul.bf16.gmra.mxu3 %v1175_v1 }
 0x1b0   : > { %859 = vmatmul.bf16.gmra.mxu2 %v1176_v6  ;;  %908 = vmatmul.bf16.gmra.mxu3 %v1176_v6 }
 0x1c3   : > { %v825_v60 = vpop.f32.mrf.mxu2  ;;  %v874_v13 = vpop.f32.mrf.mxu3 }
 0x1c4   : > { %v826_v16 = vadd.f32 %v825_v60, %v691_v15  ;;  %v875_v18 = vadd.f32 %v874_v13, %v691_v15 }
 0x1c6   : > { %v914_v25 = vmax.f32 %v826_v16, 0.0  ;;  %v915_v29 = vmax.f32 %v875_v18, 0.0 }
 0x1cb   : > { %v827_v19 = vpop.f32.mrf.mxu2  ;;  %v876_v21 = vpop.f32.mrf.mxu3 }
 0x1cc   : > { %v828_v20 = vadd.f32 %v827_v19, %v696_v17  ;;  %v877_v22 = vadd.f32 %v876_v21, %v696_v17 }
 0x1ce   : > { %v916_v26 = vmax.f32 %v828_v20, 0.0  ;;  %v917_v30 = vmax.f32 %v877_v22, 0.0 }
 0x1d0   : > { %v1542_v31 = vpack.c.bf16 %v916_v26, %v914_v25  ;;  %v1544_v47 = vpack.c.bf16 %v917_v30, %v915_v29 }
 0x1d3   : > { %v830_v33 = vpop.f32.mrf.mxu2  ;;  %v879_v34 = vpop.f32.mrf.mxu3 }
 0x1d4   : > { %v831_v35 = vadd.f32 %v830_v33, %v701_v12  ;;  %v880_v37 = vadd.f32 %v879_v34, %v701_v12 }
 0x1d6   : > { %v918_v49 = vmax.f32 %v831_v35, 0.0  ;;  %v919_v43 = vmax.f32 %v880_v37, 0.0 }
 0x1db   : > { %v832_v53 = vpop.f32.mrf.mxu2  ;;  %v881_v52 = vpop.f32.mrf.mxu3 }
 0x1dc   : > { %v833_v38 = vadd.f32 %v832_v53, %v706_v36  ;;  %v882_v39 = vadd.f32 %v881_v52, %v706_v36 }
 0x1de   : > { %v920_v40 = vmax.f32 %v833_v38, 0.0  ;;  %v921_v44 = vmax.f32 %v882_v39, 0.0 }
 0x1e0   : > { %v1546_v46 = vpack.c.bf16 %v920_v40, %v918_v49  ;;  %v1548_v48 = vpack.c.bf16 %v921_v44, %v919_v43 }
 0x1e3   : > { %v835_v51 = vpop.f32.mrf.mxu2  ;;  %v884_v50 = vpop.f32.mrf.mxu3 }
 0x1e4   : > { %v836_v54 = vadd.f32 %v835_v51, %v711_v32  ;;  %v885_v57 = vadd.f32 %v884_v50, %v711_v32 }
 0x1e6   : > { %v922_v0 = vmax.f32 %v836_v54, 0.0  ;;  %v923_v5 = vmax.f32 %v885_v57, 0.0 }
 0x1eb   : > { %v837_v58 = vpop.f32.mrf.mxu2  ;;  %v886_v62 = vpop.f32.mrf.mxu3 }
 0x1ec   : > { %v838_v45 = vadd.f32 %v837_v58, %v716_v11  ;;  %v887_v63 = vadd.f32 %v886_v62, %v716_v11 }
 0x1ee   : > { %v924_v61 = vmax.f32 %v838_v45, 0.0  ;;  %v925_v59 = vmax.f32 %v887_v63, 0.0 }
 0x1f0   : > { %v1550_v56 = vpack.c.bf16 %v924_v61, %v922_v0  ;;  %v1552_v41 = vpack.c.bf16 %v925_v59, %v923_v5 }
 0x1f3   : > { %v840_v27 = vpop.f32.mrf.mxu2  ;;  %v889_v23 = vpop.f32.mrf.mxu3 }
 0x1f4   : > { %v841_v24 = vadd.f32 %v840_v27, %v721_v9  ;;  %v890_v28 = vadd.f32 %v889_v23, %v721_v9 }
 0x1f6   : > { %v926_v13 = vmax.f32 %v841_v24, 0.0  ;;  %v927_v16 = vmax.f32 %v890_v28, 0.0 }
 0x1fb   : > { %v842_v1 = vpop.f32.mrf.mxu2  ;;  %v891_v12 = vpop.f32.mrf.mxu3 }
 0x1fc   : > { %v843_v6 = vadd.f32 %v842_v1, %v726_v55  ;;  %v892_v60 = vadd.f32 %v891_v12, %v726_v55 }
 0x1fe   : > { %v928_v15 = vmax.f32 %v843_v6, 0.0  ;;  %v929_v11 = vmax.f32 %v892_v60, 0.0 }
 0x200   : > { %v1554_v17 = vpack.c.bf16 %v928_v15, %v926_v13  ;;  %v1556_v18 = vpack.c.bf16 %v929_v11, %v927_v16 }
 0x203   : > { %v845_v19 = vpop.f32.mrf.mxu2  ;;  %v894_v20 = vpop.f32.mrf.mxu3 }
 0x204   : > { %v895_v6 = vadd.f32 %v894_v20, %v1534_v7 }
 0x206   : > { %v931_v11 = vmax.f32 %v895_v6, 0.0 }
 0x20b   : > { %v847_v21 = vpop.f32.mrf.mxu2  ;;  %v896_v22 = vpop.f32.mrf.mxu3 }
 0x20c   : > { %v897_v23 = vadd.f32 %v896_v22, %v1540_v14 }
 0x20e   : > { %v933_v13 = vmax.f32 %v897_v23, 0.0 }
 0x213   : > { %v850_v25 = vpop.f32.mrf.mxu2  ;;  %v899_v26 = vpop.f32.mrf.mxu3 }
 0x21b   : > { %v852_v29 = vpop.f32.mrf.mxu2  ;;  %v901_v9 = vpop.f32.mrf.mxu3 }
 0x21c   : > { %v902_v62 = vadd.f32 %v901_v9, %v1529_v4 }
 0x21e   : > { %v937_v24 = vmax.f32 %v902_v62, 0.0 }
 0x223   : > { %v855_v30 = vpop.f32.mrf.mxu2  ;;  %v904_v32 = vpop.f32.mrf.mxu3 }
 0x224   : > { %v856_v43 = vadd.f32 %v855_v30, %v1525_v2  ;;  %v905_v50 = vadd.f32 %v904_v32, %v1525_v2  ;;  %v848_v2 = vadd.f32 %v847_v21, %v1540_v14  ;;  %v956_v14 = vpack.c.bf16 %v933_v13, %v931_v11 }
 0x226   : > { %v938_v61 = vmax.f32 %v856_v43, 0.0  ;;  %v939_v5 = vmax.f32 %v905_v50, 0.0  ;;  %v932_v60 = vmax.f32 %v848_v2, 0.0 }
 0x22b   : > { %v857_v33 = vpop.f32.mrf.mxu2  ;;  %v906_v55 = vpop.f32.mrf.mxu3 }
 0x22c   : > { %v858_v38 = vadd.f32 %v857_v33, %v1527_v3  ;;  %v907_v49 = vadd.f32 %v906_v55, %v1527_v3  ;;  %v851_v3 = vadd.f32 %v850_v25, %v1538_v10 }
 0x22e   : > { %v940_v58 = vmax.f32 %v858_v38, 0.0  ;;  %v941_v63 = vmax.f32 %v907_v49, 0.0  ;;  %v934_v1 = vmax.f32 %v851_v3, 0.0 }
 0x230   : > { %v959_v27 = vpack.c.bf16 %v940_v58, %v938_v61  ;;  %v960_v28 = vpack.c.bf16 %v941_v63, %v939_v5 }
 0x233   : > { %v860_v34 = vpop.f32.mrf.mxu2  ;;  %v909_v35 = vpop.f32.mrf.mxu3 }
 0x234   : > { %v861_v36 = vadd.f32 %v860_v34, %v1520_v42  ;;  %v910_v37 = vadd.f32 %v909_v35, %v1520_v42  ;;  %v853_v42 = vadd.f32 %v852_v29, %v1529_v4  ;;  %v846_v4 = vadd.f32 %v845_v19, %v1534_v7  ;;  %v946_v7 = vld [vmem:[%s1605_s5] sm:$0x1] }
 0x236   : > { %v942_v44 = vmax.f32 %v861_v36, 0.0  ;;  %v943_v54 = vmax.f32 %v910_v37, 0.0  ;;  %v936_v59 = vmax.f32 %v853_v42, 0.0  ;;  %v930_v16 = vmax.f32 %v846_v4, 0.0 }
 0x238   : > { %v955_v21 = vpack.c.bf16 %v932_v60, %v930_v16 }
 0x23b   : > { %v862_v53 = vpop.f32.mrf.mxu2  ;;  %v911_v39 = vpop.f32.mrf.mxu3 }
 0x23c   : > { %v863_v52 = vadd.f32 %v862_v53, %v1536_v8  ;;  %v912_v40 = vadd.f32 %v911_v39, %v1536_v8  ;;  %v900_v8 = vadd.f32 %v899_v26, %v1538_v10  ;;  %v957_v10 = vpack.c.bf16 %v936_v59, %v934_v1 }
 0x23e   : > { %v944_v51 = vmax.f32 %v863_v52, 0.0  ;;  %v945_v57 = vmax.f32 %v912_v40, 0.0  ;;  %v935_v12 = vmax.f32 %v900_v8, 0.0 }
 0x240   : > { %v961_v45 = vpack.c.bf16 %v944_v51, %v942_v44  ;;  %v962_v0 = vpack.c.bf16 %v945_v57, %v943_v54  ;;  %v958_v15 = vpack.c.bf16 %v937_v24, %v935_v12 }
 0x242   : > { %965 = vmatpush.bf16.msrb.mxu0 %v961_v45  ;;  %978 = vmatpush.bf16.msrb.mxu1 %v962_v0 }
 0x246   : > { %966 = vmatpush.bf16.msrb.mxu0 %v959_v27  ;;  %979 = vmatpush.bf16.msrb.mxu1 %v960_v28 }
 0x24a   : > { %967 = vmatpush.bf16.msrb.mxu0 %v957_v10  ;;  %980 = vmatpush.bf16.msrb.mxu1 %v958_v15 }
 0x24e   : > { %968 = vmatpush.bf16.msrb.mxu0 %v955_v21  ;;  %981 = vmatpush.bf16.msrb.mxu1 %v956_v14 }
 0x252   : > { %969 = vmatpush.bf16.msrb.mxu0 %v1554_v17  ;;  %982 = vmatpush.bf16.msrb.mxu1 %v1556_v18 }
 0x256   : > { %970 = vmatpush.bf16.msrb.mxu0 %v1550_v56  ;;  %983 = vmatpush.bf16.msrb.mxu1 %v1552_v41  ;;  %v964_v56 = vstv %s963_s23 }
 0x25a   : > { %971 = vmatpush.bf16.msrb.mxu0 %v1546_v46  ;;  %984 = vmatpush.bf16.msrb.mxu1 %v1548_v48  ;;  %v997_v46 = vlaneseq }
 0x25c   : > { %vm999_vm2 = vcmp.lt.s32.totalorder %v997_v46, 256 }
 0x25e   : > { %972 = vmatpush.bf16.msrb.mxu0 %v1542_v31  ;;  %985 = vmatpush.bf16.msrb.mxu1 %v1544_v47 }
 0x261   : > { %973 = vmatmul.bf16.vlgmr.msrb.gmra.mxu0 %v946_v7  ;;  %986 = vmatmul.bf16.vlgmr.msrb.gmra.mxu1 %v946_v7 }
 0x2de   : > { %v974_v41 = vpop.f32.mrf.mxu0  ;;  %v987_v17 = vpop.f32.mrf.mxu1 }
 0x2df   : > { %v988_v48 = vadd.f32 %v987_v17, %v964_v56  ;;  %v975_v31 = vadd.f32 %v974_v41, %v964_v56 }
 0x2e1   : > { %v993_v18 = vrot.slane %v988_v48, 7 }
 0x2e3   : > { %v995_v47 = vsel %vm994_vm1, %v975_v31, %v993_v18 }
 0x2e4   : > { %1001 = vst.msk [vmem:[%s318_s30] sm:$0x3] %vm999_vm2, %v995_v47 }
 0x2e6   : > { %v976_v19 = vpop.f32.mrf.mxu0  ;;  %v989_v20 = vpop.f32.mrf.mxu1 }
 0x2e7 PF: > { %p15_p9 = scmp.ge.s32.totalorder %s1290_s29, 4   ;;  %s1608_s26 = smov %s1223_s27 }
 0x2e8   : > { %s1609_s27 = smov %s1299_s9  ;;  %s1610_s28 = smov %s1290_s29 }
 0x2e9   :  { %17 = sbr.rel (!%p15_p9) target bundleno = 4 (0x4), region = 121 }

</bundles_post_ra>
